<compile_context>
chip_gen: v7x
topology: tpu7x:2x2x1
jax: 0.10.0
libtpu: 0.0.40
codegen_flags: <defaults>
</compile_context>

<pallas_src>
import math

import jax
import jax.numpy as jnp
from jax import lax
from jax.experimental import pallas as pl
from jax.experimental.pallas import tpu as pltpu


def _make_attn_kernel(ch, approx_recip):
    # Fold both 1/sqrt(sqrt(ch)) factors into a single scale applied to q.
    scale = 1.0 / math.sqrt(ch)

    def attn_kernel(q_ref, k_ref, v_ref, o_ref, m_ref, l_ref, acc_ref):
        kv_step = pl.program_id(1)

        @pl.when(kv_step == 0)
        def _():
            m_ref[...] = jnp.full_like(m_ref, -jnp.inf)
            l_ref[...] = jnp.zeros_like(l_ref)
            acc_ref[...] = jnp.zeros_like(acc_ref)

        q = q_ref[...] * scale            # (Hb, C, Tq), input dtype
        k = k_ref[...]                    # (Hb, C, Tk), input dtype
        v = v_ref[...]                    # (Hb, C, Tk), input dtype

        # scores[h, s, t] = sum_c k[h, c, s] * q[h, c, t]   (no transposes)
        w = lax.dot_general(
            k, q,
            dimension_numbers=(((1,), (1,)), ((0,), (0,))),
            preferred_element_type=jnp.float32)            # (Hb, Tk, Tq) f32

        # Online softmax over the source axis (axis 1: cheap sublane reduce;
        # stats are (Hb, 1, Tq) and broadcast directly over the accumulator).
        m_prev = m_ref[...]                                # (Hb, 1, Tq) f32
        l_prev = l_ref[...]                                # (Hb, 1, Tq) f32
        m_new = jnp.maximum(m_prev, jnp.max(w, axis=1, keepdims=True))
        alpha = jnp.exp(m_prev - m_new)                    # (Hb, 1, Tq)
        p = jnp.exp(w - m_new)                             # (Hb, Tk, Tq) f32
        l_ref[...] = alpha * l_prev + jnp.sum(p, axis=1, keepdims=True)
        m_ref[...] = m_new

        # out[h, c, t] = sum_s v[h, c, s] * p[h, s, t]   (no transposes;
        # p cast back to v.dtype to match the reference numerics / bf16 MXU)
        pv = lax.dot_general(
            v, p.astype(v.dtype),
            dimension_numbers=(((2,), (1,)), ((0,), (0,))),
            preferred_element_type=jnp.float32)            # (Hb, C, Tq) f32
        acc_ref[...] = alpha * acc_ref[...] + pv

        @pl.when(kv_step == pl.num_programs(1) - 1)
        def _():
            inv_l = pl.reciprocal(l_ref[...], approx=approx_recip)
            o_ref[...] = (acc_ref[...] * inv_l).astype(o_ref.dtype)

    return attn_kernel


def _pick_kv_tile(length):
    """KV (source) tile: full length for short sequences, otherwise a
    lane-aligned tile so the score matrix stays O(T * tk) in VMEM."""
    if length <= 512 or length % 128 != 0:
        return length
    for tk in (512, 256, 128):
        if length % tk == 0:
            return tk
    return length


def _pick_head_block(bh, ch, length, tk, itemsize):
    """Pack several heads per grid step (amortizes ~0.35us/step overhead for
    small T) while staying well under the scoped-VMEM budget and keeping at
    least two head-blocks so both v7x TensorCores get work."""

    def vmem_bytes(hb):
        qo = 2 * 2 * hb * ch * length * itemsize       # q + out, double-buffered
        kv = 2 * 2 * hb * ch * tk * itemsize           # k + v, double-buffered
        scratch = hb * (ch + 2) * length * 4           # acc + m + l (f32)
        scores = 2 * hb * tk * length * 4              # w + p temporaries (f32)
        return qo + kv + scratch + scores

    budget = 8 * 1024 * 1024
    hb = 1
    for cand in range(1, min(bh, 8) + 1):
        if bh % cand != 0:
            continue
        if cand > 1 and bh // cand < 2:
            continue
        if vmem_bytes(cand) <= budget:
            hb = cand
    return hb


def qkv_attention(qkv, n_heads, *, kv_tile=None):
    """Pallas equivalent of QKVAttention.forward.

    qkv: [N, 3*H*C, T]  ->  returns [N, H*C, T]
    """
    bs, width, length = qkv.shape
    assert width % (3 * n_heads) == 0
    ch = width // (3 * n_heads)

    # Split q/k/v (chunk along channels) and fold heads into batch.
    q, k, v = jnp.split(qkv, 3, axis=1)            # each [N, H*C, T]
    bh = bs * n_heads
    q = q.reshape(bh, ch, length)
    k = k.reshape(bh, ch, length)
    v = v.reshape(bh, ch, length)

    tk = _pick_kv_tile(length) if kv_tile is None else kv_tile
    assert length % tk == 0
    assert tk == length or tk % 128 == 0, "kv tile must be lane-aligned"
    n_kv = length // tk
    hb = _pick_head_block(bh, ch, length, tk, qkv.dtype.itemsize)

    q_spec = pl.BlockSpec((hb, ch, length), lambda h, s: (h, 0, 0))
    kv_spec = pl.BlockSpec((hb, ch, tk), lambda h, s: (h, 0, s))
    o_spec = pl.BlockSpec((hb, ch, length), lambda h, s: (h, 0, 0))

    kernel = _make_attn_kernel(ch, approx_recip=(qkv.dtype != jnp.float32))

    out = pl.pallas_call(
        kernel,
        out_shape=jax.ShapeDtypeStruct((bh, ch, length), qkv.dtype),
        grid_spec=pltpu.PrefetchScalarGridSpec(
            num_scalar_prefetch=0,
            grid=(bh // hb, n_kv),
            in_specs=[q_spec, kv_spec, kv_spec],
            out_specs=o_spec,
            scratch_shapes=[
                pltpu.VMEM((hb, 1, length), jnp.float32),   # running max
                pltpu.VMEM((hb, 1, length), jnp.float32),   # running sum
                pltpu.VMEM((hb, ch, length), jnp.float32),  # output accumulator
            ],
        ),
        compiler_params=pltpu.CompilerParams(
            dimension_semantics=("parallel", "arbitrary"),
            vmem_limit_bytes=32 * 1024 * 1024,
        ),
    )(q, k, v)

    return out.reshape(bs, n_heads * ch, length)


def qkv_attention_ref(qkv, n_heads):
    """Pure-JAX reference mirroring the PyTorch forward (f32, high precision)."""
    bs, width, length = qkv.shape
    ch = width // (3 * n_heads)
    q, k, v = jnp.split(qkv, 3, axis=1)
    q = q.reshape(bs * n_heads, ch, length).astype(jnp.float32)
    k = k.reshape(bs * n_heads, ch, length).astype(jnp.float32)
    v = v.reshape(bs * n_heads, ch, length).astype(jnp.float32)
    scale = 1.0 / math.sqrt(math.sqrt(ch))
    w = jnp.einsum('bct,bcs->bts', q * scale, k * scale, precision='highest')
    w = jax.nn.softmax(w, axis=-1)
    a = jnp.einsum('bts,bcs->bct', w, v, precision='highest')
    return a.reshape(bs, -1, length)


if __name__ == "__main__":
    key = jax.random.PRNGKey(0)
    k1, k2 = jax.random.split(key)

    # Tolerances are set to cover the MXU's bf16-pass f32 matmul modes; real
    # algorithm bugs (wrong axis / missing softmax) produce O(1) errors.

    # Test 1: tiny shape, single KV step, heads packed 2 per grid step.
    n_heads, bs, ch, length = 2, 2, 8, 16            # width = 3*H*C = 48
    qkv1 = jax.random.normal(k1, (bs, 3 * n_heads * ch, length), jnp.float32)
    out1 = jax.block_until_ready(qkv_attention(qkv1, n_heads))
    ref1 = qkv_attention_ref(qkv1, n_heads)
    assert out1.shape == (bs, n_heads * ch, length)
    assert jnp.allclose(out1, ref1, atol=2e-2, rtol=2e-2)

    # Test 2: exercises the KV-tiled online-softmax path (2 KV steps).
    n_heads, bs, ch, length = 4, 1, 64, 256
    qkv2 = jax.random.normal(k2, (bs, 3 * n_heads * ch, length), jnp.float32)
    out2 = jax.block_until_ready(qkv_attention(qkv2, n_heads, kv_tile=128))
    ref2 = qkv_attention_ref(qkv2, n_heads)
    assert out2.shape == (bs, n_heads * ch, length)
    assert jnp.allclose(out2, ref2, atol=2e-2, rtol=2e-2)

    # Test 3: bf16 operands (real-model path: bf16 MXU, approx reciprocal).
    qkv3 = qkv2.astype(jnp.bfloat16)
    out3 = jax.block_until_ready(qkv_attention(qkv3, n_heads, kv_tile=128))
    ref3 = qkv_attention_ref(qkv3, n_heads)
    assert out3.shape == (bs, n_heads * ch, length)
    assert jnp.allclose(out3.astype(jnp.float32), ref3, atol=5e-2, rtol=5e-2)

    print("KERNEL_OK")
</pallas_src>

<mosaic_0001>
module attributes {stable_mosaic.version = 11 : i64} {
  func.func @attn_kernel(%arg0: i32, %arg1: i32, %arg2: memref<2x8x16xf32, #tpu.memory_space<vmem>>, %arg3: memref<2x8x16xf32, #tpu.memory_space<vmem>>, %arg4: memref<2x8x16xf32, #tpu.memory_space<vmem>>, %arg5: memref<2x8x16xf32, #tpu.memory_space<vmem>>, %arg6: memref<2x1x16xf32, #tpu.memory_space<vmem>>, %arg7: memref<2x1x16xf32, #tpu.memory_space<vmem>>, %arg8: memref<2x8x16xf32, #tpu.memory_space<vmem>>) attributes {dimension_semantics = [#tpu.dimension_semantics<parallel>, #tpu.dimension_semantics<arbitrary>], iteration_bounds = array<i64: 2, 1>, scalar_prefetch = 0 : i64, scratch_operands = 3 : i64, tpu.core_type = #tpu.core_type<tc>, window_params = [{transform_indices = @transform_0, window_bounds = array<i64: 2, 8, 16>}, {transform_indices = @transform_1, window_bounds = array<i64: 2, 8, 16>}, {transform_indices = @transform_2, window_bounds = array<i64: 2, 8, 16>}, {transform_indices = @transform_3, window_bounds = array<i64: 2, 8, 16>}]} {
    %c0_i32 = arith.constant 0 : i32
    %0 = arith.cmpi eq, %arg1, %c0_i32 : i32
    %1 = arith.extui %0 : i1 to i32
    %c0_i32_0 = arith.constant 0 : i32
    %2 = arith.cmpi ne, %1, %c0_i32_0 : i32
    scf.if %2 {
      %cst_33 = arith.constant 0xFF800000 : f32
      %34 = vector.broadcast %cst_33 : f32 to vector<2x1x16xf32>
      %c0_34 = arith.constant 0 : index
      %c0_35 = arith.constant 0 : index
      %c0_36 = arith.constant 0 : index
      %35 = vector.load %arg6[%c0_34, %c0_35, %c0_36] : memref<2x1x16xf32, #tpu.memory_space<vmem>>, vector<2x1x16xf32>
      tpu.vector_store %arg6[%c0_34, %c0_35, %c0_36], %34 {strides = array<i32>} : memref<2x1x16xf32, #tpu.memory_space<vmem>>, vector<2x1x16xf32>,
      %cst_37 = arith.constant 0.000000e+00 : f32
      %36 = vector.broadcast %cst_37 : f32 to vector<2x1x16xf32>
      %c0_38 = arith.constant 0 : index
      %c0_39 = arith.constant 0 : index
      %c0_40 = arith.constant 0 : index
      %37 = vector.load %arg7[%c0_38, %c0_39, %c0_40] : memref<2x1x16xf32, #tpu.memory_space<vmem>>, vector<2x1x16xf32>
      tpu.vector_store %arg7[%c0_38, %c0_39, %c0_40], %36 {strides = array<i32>} : memref<2x1x16xf32, #tpu.memory_space<vmem>>, vector<2x1x16xf32>,
      %cst_41 = arith.constant 0.000000e+00 : f32
      %38 = vector.broadcast %cst_41 : f32 to vector<2x8x16xf32>
      %c0_42 = arith.constant 0 : index
      %c0_43 = arith.constant 0 : index
      %c0_44 = arith.constant 0 : index
      %39 = vector.load %arg8[%c0_42, %c0_43, %c0_44] : memref<2x8x16xf32, #tpu.memory_space<vmem>>, vector<2x8x16xf32>
      tpu.vector_store %arg8[%c0_42, %c0_43, %c0_44], %38 {strides = array<i32>} : memref<2x8x16xf32, #tpu.memory_space<vmem>>, vector<2x8x16xf32>,
    } else {
    }
    %c0 = arith.constant 0 : index
    %c0_1 = arith.constant 0 : index
    %c0_2 = arith.constant 0 : index
    %3 = vector.load %arg2[%c0, %c0_1, %c0_2] : memref<2x8x16xf32, #tpu.memory_space<vmem>>, vector<2x8x16xf32>
    %cst = arith.constant 0.353553385 : f32
    %4 = vector.broadcast %cst : f32 to vector<2x8x16xf32>
    %5 = arith.mulf %3, %4 : vector<2x8x16xf32>
    %c0_3 = arith.constant 0 : index
    %c0_4 = arith.constant 0 : index
    %c0_5 = arith.constant 0 : index
    %6 = vector.load %arg3[%c0_3, %c0_4, %c0_5] : memref<2x8x16xf32, #tpu.memory_space<vmem>>, vector<2x8x16xf32>
    %c0_6 = arith.constant 0 : index
    %c0_7 = arith.constant 0 : index
    %c0_8 = arith.constant 0 : index
    %7 = vector.load %arg4[%c0_6, %c0_7, %c0_8] : memref<2x8x16xf32, #tpu.memory_space<vmem>>, vector<2x8x16xf32>
    %cst_9 = arith.constant dense<0.000000e+00> : vector<2x16x16xf32>
    %8 = tpu.matmul %6, %5, %cst_9 {dimension_numbers = #tpu.dot_dimension_numbers<[1], [1], [2], [2], [0, 0, 0, 2, 1, 2], [0], [0]>} : vector<2x8x16xf32>, vector<2x8x16xf32>, vector<2x16x16xf32> -> vector<2x16x16xf32>
    %c0_10 = arith.constant 0 : index
    %c0_11 = arith.constant 0 : index
    %c0_12 = arith.constant 0 : index
    %9 = vector.load %arg6[%c0_10, %c0_11, %c0_12] : memref<2x1x16xf32, #tpu.memory_space<vmem>>, vector<2x1x16xf32>
    %c0_13 = arith.constant 0 : index
    %c0_14 = arith.constant 0 : index
    %c0_15 = arith.constant 0 : index
    %10 = vector.load %arg7[%c0_13, %c0_14, %c0_15] : memref<2x1x16xf32, #tpu.memory_space<vmem>>, vector<2x1x16xf32>
    %cst_16 = arith.constant dense<0xFF800000> : vector<2x16xf32>
    %11 = vector.multi_reduction <maximumf>, %8, %cst_16 [1] : vector<2x16x16xf32> to vector<2x16xf32>
    %12 = vector.shape_cast %11 : vector<2x16xf32> to vector<2x1x16xf32>
    %13 = arith.maximumf %9, %12 : vector<2x1x16xf32>
    %14 = arith.subf %9, %13 : vector<2x1x16xf32>
    %15 = math.exp %14 : vector<2x1x16xf32>
    %16 = vector.broadcast %13 : vector<2x1x16xf32> to vector<2x16x16xf32>
    %17 = arith.subf %8, %16 : vector<2x16x16xf32>
    %18 = math.exp %17 : vector<2x16x16xf32>
    %19 = arith.mulf %15, %10 : vector<2x1x16xf32>
    %cst_17 = arith.constant dense<0.000000e+00> : vector<2x16xf32>
    %20 = vector.multi_reduction <add>, %18, %cst_17 [1] : vector<2x16x16xf32> to vector<2x16xf32>
    %21 = vector.shape_cast %20 : vector<2x16xf32> to vector<2x1x16xf32>
    %22 = arith.addf %19, %21 : vector<2x1x16xf32>
    %c0_18 = arith.constant 0 : index
    %c0_19 = arith.constant 0 : index
    %c0_20 = arith.constant 0 : index
    %23 = vector.load %arg7[%c0_18, %c0_19, %c0_20] : memref<2x1x16xf32, #tpu.memory_space<vmem>>, vector<2x1x16xf32>
    tpu.vector_store %arg7[%c0_18, %c0_19, %c0_20], %22 {strides = array<i32>} : memref<2x1x16xf32, #tpu.memory_space<vmem>>, vector<2x1x16xf32>,
    %c0_21 = arith.constant 0 : index
    %c0_22 = arith.constant 0 : index
    %c0_23 = arith.constant 0 : index
    %24 = vector.load %arg6[%c0_21, %c0_22, %c0_23] : memref<2x1x16xf32, #tpu.memory_space<vmem>>, vector<2x1x16xf32>
    tpu.vector_store %arg6[%c0_21, %c0_22, %c0_23], %13 {strides = array<i32>} : memref<2x1x16xf32, #tpu.memory_space<vmem>>, vector<2x1x16xf32>,
    %cst_24 = arith.constant dense<0.000000e+00> : vector<2x8x16xf32>
    %25 = tpu.matmul %7, %18, %cst_24 {dimension_numbers = #tpu.dot_dimension_numbers<[2], [1], [1], [2], [0, 0, 0, 1, 1, 2], [0], [0]>} : vector<2x8x16xf32>, vector<2x16x16xf32>, vector<2x8x16xf32> -> vector<2x8x16xf32>
    %c0_25 = arith.constant 0 : index
    %c0_26 = arith.constant 0 : index
    %c0_27 = arith.constant 0 : index
    %26 = vector.load %arg8[%c0_25, %c0_26, %c0_27] : memref<2x8x16xf32, #tpu.memory_space<vmem>>, vector<2x8x16xf32>
    %27 = vector.broadcast %15 : vector<2x1x16xf32> to vector<2x8x16xf32>
    %28 = arith.mulf %27, %26 : vector<2x8x16xf32>
    %29 = arith.addf %28, %25 : vector<2x8x16xf32>
    %c0_28 = arith.constant 0 : index
    %c0_29 = arith.constant 0 : index
    %c0_30 = arith.constant 0 : index
    %30 = vector.load %arg8[%c0_28, %c0_29, %c0_30] : memref<2x8x16xf32, #tpu.memory_space<vmem>>, vector<2x8x16xf32>
    tpu.vector_store %arg8[%c0_28, %c0_29, %c0_30], %29 {strides = array<i32>} : memref<2x8x16xf32, #tpu.memory_space<vmem>>, vector<2x8x16xf32>,
    %c0_i32_31 = arith.constant 0 : i32
    %31 = arith.cmpi eq, %arg1, %c0_i32_31 : i32
    %32 = arith.extui %31 : i1 to i32
    %c0_i32_32 = arith.constant 0 : i32
    %33 = arith.cmpi ne, %32, %c0_i32_32 : i32
    scf.if %33 {
      %c0_33 = arith.constant 0 : index
      %c0_34 = arith.constant 0 : index
      %c0_35 = arith.constant 0 : index
      %34 = vector.load %arg7[%c0_33, %c0_34, %c0_35] : memref<2x1x16xf32, #tpu.memory_space<vmem>>, vector<2x1x16xf32>
      %35 = tpu.reciprocal %34 : vector<2x1x16xf32> -> vector<2x1x16xf32>
      %c0_36 = arith.constant 0 : index
      %c0_37 = arith.constant 0 : index
      %c0_38 = arith.constant 0 : index
      %36 = vector.load %arg8[%c0_36, %c0_37, %c0_38] : memref<2x8x16xf32, #tpu.memory_space<vmem>>, vector<2x8x16xf32>
      %37 = vector.broadcast %35 : vector<2x1x16xf32> to vector<2x8x16xf32>
      %38 = arith.mulf %36, %37 : vector<2x8x16xf32>
      %c0_39 = arith.constant 0 : index
      %c0_40 = arith.constant 0 : index
      %c0_41 = arith.constant 0 : index
      %39 = vector.load %arg5[%c0_39, %c0_40, %c0_41] : memref<2x8x16xf32, #tpu.memory_space<vmem>>, vector<2x8x16xf32>
      tpu.vector_store %arg5[%c0_39, %c0_40, %c0_41], %38 {strides = array<i32>} : memref<2x8x16xf32, #tpu.memory_space<vmem>>, vector<2x8x16xf32>,
    } else {
    }
    return
  }
  func.func @transform_0(%arg0: i32, %arg1: i32) -> (i32, i32, i32) {
    %c0_i32 = arith.constant 0 : i32
    %c0_i32_0 = arith.constant 0 : i32
    %c0_i32_1 = arith.constant 0 : i32
    return %arg0, %c0_i32, %c0_i32_0 : i32, i32, i32
  }
  func.func @transform_1(%arg0: i32, %arg1: i32) -> (i32, i32, i32) {
    %c0_i32 = arith.constant 0 : i32
    %c0_i32_0 = arith.constant 0 : i32
    return %arg0, %c0_i32, %arg1 : i32, i32, i32
  }
  func.func @transform_2(%arg0: i32, %arg1: i32) -> (i32, i32, i32) {
    %c0_i32 = arith.constant 0 : i32
    %c0_i32_0 = arith.constant 0 : i32
    return %arg0, %c0_i32, %arg1 : i32, i32, i32
  }
  func.func @transform_3(%arg0: i32, %arg1: i32) -> (i32, i32, i32) {
    %c0_i32 = arith.constant 0 : i32
    %c0_i32_0 = arith.constant 0 : i32
    %c0_i32_1 = arith.constant 0 : i32
    return %arg0, %c0_i32, %c0_i32_0 : i32, i32, i32
  }
}

</mosaic_0001>

<bundles_post_ra>
// kernel: tpu_custom_call.1
= control target key start
LH: loop header
LB: loop body
LE: loop exit
PB: predicated region body
PF: predicated region fallthrough
CT: control target
= control target key end

     0   :  { %s1647_s0 = inlined_call_operand.hbm [shape: f32[4,8,16], index: 0, kind: input, shape index: {}]   ;;  %s1648_s1 = inlined_call_operand.hbm [shape: f32[4,8,16], index: 1, kind: input, shape index: {}]   ;;  %s1649_s2 = inlined_call_operand.hbm [shape: f32[4,8,16], index: 2, kind: input, shape index: {}]   ;;  %s1650_s3 = inlined_call_operand.hbm [shape: f32[4,8,16], index: 3, kind: output, shape index: {}]  }
   0x1   :  { %1660 = sst [smem:[#allocation18_spill]] %s1648_s1 }
   0x2   :  { %8 = vsyncpa [#allocation6], 0 }
   0x3   :  { %10 = vsyncpa [#allocation6 + $0x1], 0 }
   0x4   :  { %11 = vsyncpa [#allocation9], 0 }
   0x5   :  { %13 = vsyncpa [#allocation9 + $0x1], 0 }
   0x6   :  { %14 = vsyncpa [#allocation7], 0 }
   0x7   :  { %16 = vsyncpa [#allocation7 + $0x1], 0  ;;  %s1331_s12 = smov 0   ;;  %s1333_s13 = smov 0  }
   0x8   :  { %s1335_s14 = smov 0   ;;  %s1337_s15 = smov 0  }
   0x9   :  { %s1339_s16 = smov 0   ;;  %s1341_s17 = smov 0  }
   0xa LB: > { %1661 = sst [smem:[#allocation15_spill]] %s1293_s16  ;;  %s1362_s18 = sadd.s32 4294967295, %s1297_s17   ;;  %s1297_s17 = sphi %s1341_s17, %s22_s17   ;;  %s1293_s16 = sphi %s1339_s16, %s1684_s16   ;;  %s1289_s15 = sphi %s1337_s15, %s1683_s15   ;;  %s1285_s14 = sphi %s1335_s14, %s1687_s14   ;;  %s1281_s13 = sphi %s1333_s13, %s1686_s13   ;;  %s1277_s12 = sphi %s1331_s12, %s1685_s12  }
   0xb   : > { %s951_s19 = sadd.s32 4294967294, %s1297_s17   ;;  %s34_s20 = sadd.s32 1, %s1293_s16 }
   0xc   : > { %s41_s21 = sadd.s32 1, %s1285_s14  ;;  %p36_p0 = scmp.ge.s32.totalorder %s34_s20, 2 }
   0xd   : > { %p48_p1 = scmp.ne.s32.totalorder %s1285_s14, %s1281_s13  ;;  %p49_p2 = scmp.eq.s32.totalorder %s1297_s17, 0 }
   0xe   : > { %p54_p3 = scmp.ne.s32.totalorder %s1281_s13, %s1277_s12  ;;  %s1689_s20 = smov (%p36_p0, %s34_s20), 0 }
   0xf   : > { %1662 = sst [smem:[#allocation16_spill]] %s1689_s20  ;;  %p1374_p4 = por %p49_p2, %p48_p1 }
  0x10   : > { %p55_p5 = scmp.eq.s32.totalorder %s1362_s18, 0  ;;  %s38_s23 = ssub.s32 %s1293_s16, %s1689_s20 }
  0x11   : > { %p134_p6 = scmp.eq.s32.totalorder %s1362_s18, 1  ;;  %p39_p7 = scmp.eq.s32.totalorder %s38_s23, 0 }
  0x12   : > { %p1382_p8 = por %p55_p5, %p54_p3  ;;  %p140_p10 = scmp.eq.s32.totalorder %s951_s19, 1 }
  0x13   : > { %p1386_p9 = por %p134_p6, %p48_p1  ;;  %p1047_p13 = scmp.lt.s32.totalorder %s1297_s17, 2 }
  0x14   : > { %s1664_s24 = scalar_select %p1382_p8, 1, 0 }
  0x15   : > { %s1665_s25 = scalar_select %p1386_p9, 1, 0 }
  0x16   : > { %s1391_s26 = scalar_select %p39_p7, %s1285_s14, %s41_s21  }
  0x17   : > { %p1393_p11 = por %p140_p10, %p54_p3  ;;  %s1653_s28 = sand.u32 1, %s1285_s14  }
  0x18   : > { %1666 = sst [smem:[#allocation17_spill]] %s1391_s26  ;;  %s1402_s29 = sshll.u32 %s1653_s28, 4 }
  0x19   : > { %s1667_s27 = scalar_select %p1393_p11, 1, 0 }
  0x1a   : > { %s1405_s30 = sshll.u32 %s1293_s16, 8  ;;  %p1409_p0 = pnand %p1047_p13, %p1374_p4 }
  0x1b   : > { %s181_s5 = sand.u32 1, %s1297_s17   ;;  %s1669_s1 = sld [smem:[#allocation18_spill]] }
  0x1c   : > { %s185_s9 = scalar_lea.vmem [#allocation8], %s1402_s29  ;;  %s1425_s11 = scalar_lea.sflag [#allocation9], %s181_s5 }
  0x1d   : > { %s193_s10 = sshll.u32 %s185_s9, 4  ;;  %p1431_p4 = pneg %p1409_p0  ;;  %s1422_s10 = int_to_ptr.vmem [resolvable:$true] %s193_s10 }
  0x21   : > { %s1418_s8 = scalar_lea.hbm %s1669_s1, %s1405_s30  ;;  %s1126_s6 = scalar_lea.hbm %s1669_s1, 512 }
  0x22   : > { %s1121_s19 = scalar_lea.hbm %s1418_s8, 256  ;;  %p1127_p7 = scmp.lt.u32.totalorder %s1418_s8, %s1669_s1 }
  0x23   : > { %p1122_p3 = scmp.ne.s32.totalorder %s1418_s8, %s1121_s19  ;;  %p1128_p10 = scmp.lt.u32.totalorder %s1126_s6, %s1121_s19 }
  0x24   : > { %p1130_p12 = scmp.lt.u32.totalorder %s1121_s19, %s1418_s8 }
  0x25   : > { %p1124_p5 = pnand %p1431_p4, %p1122_p3  ;;  %p1129_p13 = por %p1128_p10, %p1127_p7 }
  0x27   : > { %p1125_p6 = pneg %p1124_p5  ;;  %p1131_p1 = por %p1130_p12, %p1129_p13 }
  0x29   : > { %p1132_p2 = pnand %p1131_p1, %p1125_p6 }
  0x2b   : > { %1135 = shalt.err (!%p1132_p2)
}
  0x2c   : > { %s1136_s5 = scalar_lea.vmem %s1422_s10, 256  ;;  %s1299_s22 = smov [#allocation8]  }
  0x2d   : > { %p1137_p3 = scmp.ne.s32.totalorder %s1422_s10, %s1136_s5  ;;  %s1141_s23 = sshll.u32 %s1299_s22, 4  ;;  %s1142_s23 = int_to_ptr.vmem [resolvable:$false] %s1141_s23 }
  0x2e   : > { %s1143_s7 = scalar_lea.vmem %s1142_s23, 512  ;;  %p1144_p9 = scmp.lt.s32.totalorder %s1422_s10, %s1142_s23 }
  0x2f   : > { %p1139_p5 = pnand %p1137_p3, %p1431_p4  ;;  %p1145_p8 = scmp.lt.s32.totalorder %s1143_s7, %s1136_s5 }
  0x31   : > { %p1140_p11 = pneg %p1139_p5  ;;  %p1146_p7 = por %p1145_p8, %p1144_p9 }
  0x33   : > { %p1147_p10 = pnand %p1146_p7, %p1140_p11 }
  0x35   : > { %1150 = shalt.err (!%p1147_p10)
}
  0x36   : > { %s1654_s19 = smov 128   ;;  %s1656_s6 = smov 8  }
  0x37   : > { %1039 = dma.hbm_to_vmem [thread:$0]  (!%p1409_p0), %s1418_s8, 256, %s1422_s10, %s1425_s11, %s1654_s19, %s1654_s19, %s1656_s6  }
  0x38   : > { %p1671_p8 = scmp.lt.s32.totalorder %s1297_s17, 3  ;;  %p1672_p9 = scmp.ge.s32.totalorder %s1297_s17, 1 }
  0x39   : > { %s1470_s23 = scalar_lea.hbm %s1647_s0, %s1405_s30  ;;  %s164_s7 = scalar_lea.vmem [#allocation5], %s1402_s29 }
  0x3a   : > { %p1462_p11 = pnand %p1672_p9, %p1671_p8  ;;  %s171_s28 = sshll.u32 %s164_s7, 4  ;;  %s1473_s28 = int_to_ptr.vmem [resolvable:$true] %s171_s28 }
  0x3b   : > { %s1479_s19 = scalar_lea.hbm %s1649_s2, %s1405_s30  ;;  %s1674_s6 = sand.u32 1, %s1285_s14  }
  0x3c   : > { %s1673_s9 = scalar_select %p1462_p11, 1, 0 }
  0x3d   : > { %s1483_s1 = scalar_lea.sflag [#allocation6], %s1674_s6  ;;  %s1151_s20 = scalar_lea.hbm %s1470_s23, 256 }
  0x3e   : > { %p1152_p12 = scmp.ne.s32.totalorder %s1470_s23, %s1151_s20  ;;  %s1156_s16 = scalar_lea.hbm %s1647_s0, 512 }
  0x3f   : > { %p1157_p6 = scmp.lt.u32.totalorder %s1470_s23, %s1647_s0  ;;  %p1158_p13 = scmp.lt.u32.totalorder %s1156_s16, %s1151_s20 }
  0x40   : > { %p1154_p1 = pnand %p1152_p12, %p1431_p4  ;;  %p1160_p5 = scmp.lt.u32.totalorder %s1151_s20, %s1470_s23 }
  0x41   : > { %p1159_p3 = por %p1158_p13, %p1157_p6 }
  0x42   : > { %p1155_p2 = pneg %p1154_p1 }
  0x43   : > { %p1161_p7 = por %p1160_p5, %p1159_p3 }
  0x45   : > { %p1162_p10 = pnand %p1161_p7, %p1155_p2 }
  0x47   : > { %1165 = shalt.err (!%p1162_p10)
}
  0x48   : > { %s1166_s30 = scalar_lea.vmem %s1473_s28, 256  ;;  %s1302_s6 = smov [#allocation5]  }
  0x49   : > { %p1167_p8 = scmp.ne.s32.totalorder %s1473_s28, %s1166_s30  ;;  %s1171_s8 = sshll.u32 %s1302_s6, 4  ;;  %s1172_s8 = int_to_ptr.vmem [resolvable:$false] %s1171_s8 }
  0x4a   : > { %s1173_s26 = scalar_lea.vmem %s1172_s8, 512  ;;  %p1174_p1 = scmp.lt.s32.totalorder %s1473_s28, %s1172_s8 }
  0x4b   : > { %p1169_p9 = pnand %p1167_p8, %p1431_p4  ;;  %p1175_p11 = scmp.lt.s32.totalorder %s1173_s26, %s1166_s30 }
  0x4d   : > { %p1170_p12 = pneg %p1169_p9  ;;  %p1176_p6 = por %p1175_p11, %p1174_p1 }
  0x4f   : > { %p1177_p13 = pnand %p1176_p6, %p1170_p12 }
  0x51   : > { %1180 = shalt.err (!%p1177_p13)
}
  0x52   : > { %s1675_s16 = smov 8   ;;  %s1676_s20 = smov 128  }
  0x53   : > { %1036 = dma.hbm_to_vmem [thread:$0]  (!%p1409_p0), %s1470_s23, 256, %s1473_s28, %s1483_s1, %s1676_s20, %s1676_s20, %s1675_s16  }
  0x54   : > { %s207_s10 = scalar_lea.vmem [#allocation10], %s1402_s29  ;;  %s1181_s22 = scalar_lea.hbm %s1479_s19, 256 }
  0x55   : > { %s215_s5 = sshll.u32 %s207_s10, 4  ;;  %p1182_p11 = scmp.ne.s32.totalorder %s1479_s19, %s1181_s22  ;;  %s1511_s5 = int_to_ptr.vmem [resolvable:$true] %s215_s5 }
  0x56   : > { %s1186_s6 = scalar_lea.hbm %s1649_s2, 512  ;;  %p1187_p5 = scmp.lt.u32.totalorder %s1479_s19, %s1649_s2 }
  0x57   : > { %p1184_p2 = pnand %p1182_p11, %p1431_p4  ;;  %p1188_p7 = scmp.lt.u32.totalorder %s1186_s6, %s1181_s22 }
  0x58   : > { %p1190_p8 = scmp.lt.u32.totalorder %s1181_s22, %s1479_s19 }
  0x59   : > { %p1185_p3 = pneg %p1184_p2  ;;  %p1189_p10 = por %p1188_p7, %p1187_p5 }
  0x5b   : > { %p1191_p9 = por %p1190_p8, %p1189_p10 }
  0x5d   : > { %p1192_p12 = pnand %p1191_p9, %p1185_p3 }
  0x5f   : > { %1195 = shalt.err (!%p1192_p12)
}
  0x60   : > { %s1196_s1 = scalar_lea.vmem %s1511_s5, 256  ;;  %s1303_s28 = smov [#allocation10]  }
  0x61   : > { %p1197_p1 = scmp.ne.s32.totalorder %s1511_s5, %s1196_s1  ;;  %s1201_s29 = sshll.u32 %s1303_s28, 4  ;;  %s1202_s29 = int_to_ptr.vmem [resolvable:$false] %s1201_s29 }
  0x62   : > { %s1203_s23 = scalar_lea.vmem %s1202_s29, 512  ;;  %p1204_p11 = scmp.lt.s32.totalorder %s1511_s5, %s1202_s29 }
  0x63   : > { %p1199_p6 = pnand %p1197_p1, %p1431_p4  ;;  %p1205_p2 = scmp.lt.s32.totalorder %s1203_s23, %s1196_s1 }
  0x65   : > { %p1200_p13 = pneg %p1199_p6  ;;  %p1206_p5 = por %p1205_p2, %p1204_p11 }
  0x67   : > { %p1207_p7 = pnand %p1206_p5, %p1200_p13 }
  0x69   : > { %1210 = shalt.err (!%p1207_p7)
}
  0x6a   : > { %1042 = dma.hbm_to_vmem [thread:$0]  (!%p1409_p0), %s1479_s19, 256, %s1511_s5, %s1425_s11, %s1676_s20, %s1676_s20, %s1675_s16  }
  0x6b   : > { %p1677_p4 = scmp.ne.s32.totalorder %s1673_s9, 0 }
  0x6c   : > { %s1541_s21 = sand.u32 (!%p1677_p4), 1, %s1281_s13   ;;  %p1678_p3 = scmp.ne.s32.totalorder (!%p1677_p4), %s1664_s24, 0 }
  0x6d   : > { %227 = sbr.rel (%p1677_p4) target bundleno = 754 (0x2f2), region = 32  ;;  %s1544_s10 = sshll.u32 (!%p1677_p4), %s1541_s21, 4 }
  0x6e   : > { %s230_s4 = scalar_lea.sflag (!%p1677_p4), [#allocation6], %s1541_s21  ;;  %s233_s22 = scalar_lea.vmem (!%p1677_p4), [#allocation5], %s1544_s10 }
  0x74   : > { %1264 = dma.done.wait (%p1678_p3), %s230_s4, 256  }
  0x75   : > { %1266 = vsyncadd (%p1678_p3), %s230_s4, 4294967040  ;;  %s238_s11 = sand.u32 1, %s1362_s18   ;;  %s242_s9 = scalar_lea.vmem [#allocation8], %s1544_s10 }
  0x76   : > { %s239_s19 = scalar_lea.sflag [#allocation9], %s238_s11 }
  0x77   : > { %1268 = dma.done.wait (%p1678_p3), %s239_s19, 512  }
  0x78   : > { %1270 = vsyncadd (%p1678_p3), %s239_s19, 4294966784  ;;  %v304_v0 = vld [vmem:[%s242_s9] sm:$0xff]  ;;  %v305_v3 = vld [vmem:[%s242_s9 + $0x8] sm:$0xff]  ;;  %vm340_vm0 = vcmask 64512   ;;  %vm292_vm1 = vcmask 122880   ;;  %v1304_v10 = vmov -inf   ;;  %v568_v20 = vlaneseq }
  0x79   : > { %308 = vxpose.xlu0.b32.start.end [1/1] (short) (narrow) %v304_v0, 16  ;;  %v300_v1 = vld [vmem:[%s233_s22] sm:$0xff]  ;;  %v301_v4 = vld [vmem:[%s233_s22 + $0x8] sm:$0xff]  ;;  %293 = vst.msk [vmem:[#allocation2] sm:$0x1] %vm292_vm1, %v1304_v10  ;;  %vm297_vm2 = vcmask 130048  }
  0x7a   : > { %v302_v2 = vmul.f32 0.35355338, %v300_v1  ;;  %v303_v5 = vmul.f32 0.35355338, %v301_v4  ;;  %294 = vst.msk [vmem:[#allocation2 + $0x1] sm:$0x1] %vm292_vm1, %v1304_v10 }
  0x7b   : > { %v1305_v11 = vmov 0.0   ;;  %v1306_v12 = vmov 0.0|0.0   ;;  %vm1307_vm3 = vmmov 0   ;;  %v569_v27 = vshrl.u32 %v568_v20, 7  ;;  %s251_s18 = scalar_lea.vmem [#allocation10], %s1544_s10  ;;  %s283_s24 = scalar_lea.vmem [#allocation11], %s1544_s10 }
  0x7c   : > { %995 = vmatprep.subr.mxu0 %v302_v2  ;;  %1000 = vmatprep.subr.mxu1 %v303_v5  ;;  %295 = vst.msk [vmem:[#allocation3] sm:$0x1] %vm292_vm1, %v1305_v11  ;;  %296 = vst.msk [vmem:[#allocation3 + $0x1] sm:$0x1] %vm292_vm1, %v1305_v11  ;;  %v306_v0 = vld [vmem:[%s251_s18] sm:$0xff]  ;;  %s982_s16 = sshll.u32 %s1289_s15, 8 }
  0x7d   : > { %996 = vmatpush3.msra.mxu0 %v302_v2  ;;  %1001 = vmatpush3.msra.mxu1 %v303_v5  ;;  %298 = vst.msk [vmem:[#allocation4] sm:$0xff] %vm297_vm2, %v1305_v11  ;;  %299 = vst.msk [vmem:[#allocation4 + $0x8] sm:$0xff] %vm297_vm2, %v1305_v11  ;;  %v1568_v33 = vsub.s32 0, %v569_v27  ;;  %s822_s20 = sshll.u32 %s283_s24, 4  ;;  %s1595_s30 = scalar_lea.hbm %s1650_s3, %s982_s16  ;;  %s1597_s20 = int_to_ptr.vmem [resolvable:$true] %s822_s20 }
  0x7e   : > { %422 = vxpose.xlu0.b32.start.end [1/1] (short) (narrow) %v305_v3, 16  ;;  %1019 = vmatprep.subr.bf16.mxu0 %v1306_v12  ;;  %s809_s6 = scalar_lea.sflag [#allocation7], %s1541_s21  ;;  %s1211_s8 = scalar_lea.vmem %s1597_s20, 256 }
  0x7f   : > { %1022 = vmatprep.subr.bf16.mxu1 %v1306_v12  ;;  %p1212_p0 = scmp.ne.s32.totalorder %s1597_s20, %s1211_s8  ;;  %p1679_p10 = scmp.ne.s32.totalorder %s1665_s25, 0 }
  0x80   : > { %v535_v31 = vld [vmem:[#allocation2] sm:$0x1]  ;;  %s1308_s15 = smov [#allocation11]  }
  0x81   : > { %v536_v44 = vld [vmem:[#allocation2 + $0x1] sm:$0x1]  ;;  %p1213_p8 = pnand %p1212_p0, %p1679_p10  ;;  %s1215_s26 = sshll.u32 %s1308_s15, 4  ;;  %s1216_s26 = int_to_ptr.vmem [resolvable:$false] %s1215_s26 }
  0x82   : > { %s1217_s1 = scalar_lea.vmem %s1216_s26, 512  ;;  %p1218_p12 = scmp.lt.s32.totalorder %s1597_s20, %s1216_s26 }
  0x83   : > { %p1214_p9 = pneg %p1213_p8  ;;  %p1219_p1 = scmp.lt.s32.totalorder %s1217_s1, %s1211_s8 }
  0x85   : > { %p1220_p6 = por %p1219_p1, %p1218_p12 }
  0x87   : > { %p1221_p13 = pnand %p1220_p6, %p1214_p9 }
  0xf9   : > { %v324_v6 = vpop.trf.xlu0 }
  0xfa   : > { %997 = vmatprep.mubr.msk.f32.mxu0 %vm340_vm0, %v324_v6 }
  0xfd   : > { %v325_v7 = vpop.trf.xlu0 }
  0xfe   : > { %998 = vmatmul.mubr.msk.f32.vlgmr.msra.gmra.mrb[0].mxu0 %vm340_vm0, %v325_v7 }
  0xff   : > { %1009 = vmatprep.mubr.msk.f32.mxu0 %vm1307_vm3, %v1305_v11 }
 0x101   : > { %v438_v8 = vpop.trf.xlu0 }
 0x102   : > { %1002 = vmatprep.mubr.msk.f32.mxu1 %vm340_vm0, %v438_v8 }
 0x105   : > { %v439_v9 = vpop.trf.xlu0 }
 0x106   : > { %1003 = vmatmul.mubr.msk.f32.vlgmr.msra.gmra.mrb[0].mxu1 %vm340_vm0, %v439_v9 }
 0x107   : > { %1016 = vmatprep.mubr.msk.f32.mxu1 %vm1307_vm3, %v1305_v11 }
 0x1d1   : > { %v999_v13 = vpop.f32.mrb[0].mxu0 }
 0x1d2   : > { %v541_v14 = vsel %vm297_vm2, %v999_v13, -inf  ;;  %v413_v15 = vpop.f32.mrb[1].mxu0 }
 0x1d3   : > { %v540_v16 = vsel %vm297_vm2, %v413_v15, -inf }
 0x1d4   : > { %v542_v17 = vmax.f32 %v540_v16, %v541_v14  ;;  %v307_v14 = vld [vmem:[%s251_s18 + $0x8] sm:$0xff] }
 0x1d6   : > { %v543_v18 = vrot.slane %v542_v17, 4 }
 0x1d8   : > { %v544_v19 = vmax.f32 %v542_v17, %v543_v18 }
 0x1d9   : > { %v1004_v21 = vpop.f32.mrb[0].mxu1 }
 0x1da   : > { %v545_v22 = vrot.slane %v544_v19, 2  ;;  %v550_v23 = vsel %vm297_vm2, %v1004_v21, -inf  ;;  %v526_v24 = vpop.f32.mrb[1].mxu1 }
 0x1db   : > { %v549_v25 = vsel %vm297_vm2, %v526_v24, -inf }
 0x1dc   : > { %v546_v26 = vmax.f32 %v544_v19, %v545_v22  ;;  %v551_v28 = vmax.f32 %v549_v25, %v550_v23  ;;  %v538_v23 = vld [vmem:[#allocation3 + $0x1] sm:$0x1] }
 0x1de   : > { %v547_v29 = vrot.slane %v546_v26, 1  ;;  %v552_v30 = vrot.slane %v551_v28, 4 }
 0x1e0   : > { %v548_v32 = vmax.f32 %v546_v26, %v547_v29  ;;  %v553_v34 = vmax.f32 %v551_v28, %v552_v30  ;;  %v763_v29 = vld [vmem:[#allocation4] sm:$0xff] }
 0x1e2   : > { %v558_v35 = vmax.f32 %v535_v31, %v548_v32  ;;  %v554_v36 = vrot.slane %v553_v34, 2 }
 0x1e4   : > { %v560_v37 = vsub.f32 %v535_v31, %v558_v35  ;;  %v571_v38 = vrot.slane %v558_v35, %v1568_v33  ;;  %615 = vst.msk [vmem:[#allocation2] sm:$0x1] %vm292_vm1, %v558_v35  ;;  %v555_v39 = vmax.f32 %v553_v34, %v554_v36  ;;  %v764_v36 = vld [vmem:[#allocation4 + $0x8] sm:$0xff] }
 0x1e6   : > { %v562_v40 = vmul.f32 1.442695, %v560_v37  ;;  %v578_v41 = vsub.f32 %v413_v15, %v571_v38  ;;  %v579_v42 = vsub.f32 %v999_v13, %v571_v38  ;;  %v556_v43 = vrot.slane %v555_v39, 1  ;;  %v537_v13 = vld [vmem:[#allocation3] sm:$0x1] }
 0x1e8   : > { %1105 = vpow2.f32 %v562_v40  ;;  %v582_v45 = vmul.f32 1.442695, %v578_v41  ;;  %v584_v46 = vmul.f32 1.442695, %v579_v42  ;;  %v557_v47 = vmax.f32 %v555_v39, %v556_v43 }
 0x1ea   : > { %1107 = vpow2.f32 %v582_v45  ;;  %v559_v48 = vmax.f32 %v536_v44, %v557_v47 }
 0x1eb   : > { %1109 = vpow2.f32 %v584_v46 }
 0x1ec   : > { %v561_v49 = vsub.f32 %v536_v44, %v559_v48  ;;  %v575_v50 = vrot.slane %v559_v48, %v1568_v33  ;;  %616 = vst.msk [vmem:[#allocation2 + $0x1] sm:$0x1] %vm292_vm1, %v559_v48 }
 0x1ee   : > { %v564_v51 = vmul.f32 1.442695, %v561_v49  ;;  %v580_v52 = vsub.f32 %v526_v24, %v575_v50  ;;  %v581_v53 = vsub.f32 %v1004_v21, %v575_v50 }
 0x1f0   : > { %1111 = vpow2.f32 %v564_v51  ;;  %v586_v54 = vmul.f32 1.442695, %v580_v52  ;;  %v588_v55 = vmul.f32 1.442695, %v581_v53 }
 0x1f2   : > { %v1106_v56 = vpop.eup %1105  ;;  %1113 = vpow2.f32 %v586_v54 }
 0x1f3   : > { %1115 = vpow2.f32 %v588_v55  ;;  %v770_v57 = vrot.slane %v1106_v56, %v1568_v33  ;;  %v590_v19 = vmul.f32 %v1106_v56, %v537_v13 }
 0x1f4   : > { %v1108_v58 = vpop.eup %1107 }
 0x1f5   : > { %v1110_v59 = vpop.eup %1109  ;;  %v592_v60 = vsel %vm297_vm2, %v1108_v58, 0.0  ;;  %v777_v30 = vmul.f32 %v770_v57, %v763_v29 }
 0x1f6   : > { %v593_v61 = vsel %vm297_vm2, %v1110_v59, 0.0  ;;  %v1020_v62 = vpack.c.bf16 %v1110_v59, %v1108_v58 }
 0x1f7   : > { %v594_v63 = vadd.f32 %v593_v61, %v592_v60 }
 0x1f8   : > { %1021 = vmatpush3.bf16.msra.mxu0 %v1020_v62 }
 0x1f9   : > { %v595_v1 = vrot.slane %v594_v63, 4 }
 0x1fa   : > { %v1112_v2 = vpop.eup %1111 }
 0x1fb   : > { %v596_v3 = vadd.f32 %v595_v1, %v594_v63  ;;  %1010 = vmatmul.mubr.msk.f32.vlgmr.msra.gmra.mrb[2].mxu0 %vm297_vm2, %v306_v0  ;;  %v774_v4 = vrot.slane %v1112_v2, %v1568_v33  ;;  %v591_v26 = vmul.f32 %v1112_v2, %v538_v23 }
 0x1fc   : > { %v1114_v5 = vpop.eup %1113 }
 0x1fd   : > { %v1116_v6 = vpop.eup %1115  ;;  %v597_v7 = vrot.slane %v596_v3, 2  ;;  %v601_v8 = vsel %vm297_vm2, %v1114_v5, 0.0  ;;  %v778_v38 = vmul.f32 %v774_v4, %v764_v36 }
 0x1fe   : > { %v602_v9 = vsel %vm297_vm2, %v1116_v6, 0.0  ;;  %v1023_v10 = vpack.c.bf16 %v1116_v6, %v1114_v5 }
 0x1ff   : > { %v598_v11 = vadd.f32 %v597_v7, %v596_v3  ;;  %v603_v12 = vadd.f32 %v602_v9, %v601_v8 }
 0x200   : > { %1024 = vmatpush3.bf16.msra.mxu1 %v1023_v10 }
 0x201   : > { %v599_v15 = vrot.slane %v598_v11, 1  ;;  %v604_v16 = vrot.slane %v603_v12, 4 }
 0x203   : > { %v600_v17 = vadd.f32 %v599_v15, %v598_v11  ;;  %v605_v18 = vadd.f32 %v604_v16, %v603_v12  ;;  %1017 = vmatmul.mubr.msk.f32.vlgmr.msra.gmra.mrb[2].mxu1 %vm297_vm2, %v307_v14 }
 0x205   : > { %v606_v20 = vrot.slane %v605_v18, 2  ;;  %v610_v21 = vadd.f32 %v600_v17, %v590_v19 }
 0x207   : > { %v607_v22 = vadd.f32 %v606_v20, %v605_v18  ;;  %613 = vst.msk [vmem:[#allocation3] sm:$0x1] %vm292_vm1, %v610_v21 }
 0x209   : > { %v608_v24 = vrot.slane %v607_v22, 1 }
 0x20b   : > { %v609_v25 = vadd.f32 %v608_v24, %v607_v22 }
 0x20d   : > { %v611_v27 = vadd.f32 %v609_v25, %v591_v26 }
 0x20e   : > { %v786_v28 = vld [vmem:[#allocation3] sm:$0x1] }
 0x20f   : > { %614 = vst.msk [vmem:[#allocation3 + $0x1] sm:$0x1] %vm292_vm1, %v611_v27  ;;  %1117 = vrcp.f32 %v786_v28 }
 0x216   : > { %v787_v35 = vld [vmem:[#allocation3 + $0x1] sm:$0x1] }
 0x217   : > { %1119 = vrcp.f32 %v787_v35 }
 0x219   : > { %v1118_v37 = vpop.eup %1117 }
 0x21a   : > { %v797_v42 = vrot.slane %v1118_v37, %v1568_v33 }
 0x221   : > { %v1120_v45 = vpop.eup %1119 }
 0x222   : > { %v801_v46 = vrot.slane %v1120_v45, %v1568_v33 }
 0x2ce   : > { %v686_v31 = vpop.f32.mrb[2].mxu0 }
 0x2cf   : > { %v779_v32 = vadd.f32 %v777_v30, %v686_v31  ;;  %v1011_v34 = vpop.f32.mrb[3].mxu0 }
 0x2d1   : > { %781 = vst.msk [vmem:[#allocation4] sm:$0xff] %vm297_vm2, %v779_v32 }
 0x2d6   : > { %v759_v39 = vpop.f32.mrb[2].mxu1 }
 0x2d7   : > { %v780_v40 = vadd.f32 %v778_v38, %v759_v39  ;;  %v1018_v41 = vpop.f32.mrb[3].mxu1 }
 0x2d8   : > { %v790_v43 = vld [vmem:[#allocation4] sm:$0xff] }
 0x2d9   : > { %782 = vst.msk [vmem:[#allocation4 + $0x8] sm:$0xff] %vm297_vm2, %v780_v40  ;;  %v804_v44 = vmul.f32 %v797_v42, %v790_v43 }
 0x2db   : > { %806 = vst.msk [vmem:[%s283_s24] sm:$0xff] %vm297_vm2, %v804_v44 }
 0x2e0   : > { %v791_v47 = vld [vmem:[#allocation4 + $0x8] sm:$0xff] }
 0x2e1   : > { %v805_v48 = vmul.f32 %v801_v46, %v791_v47 }
 0x2e3   : > { %807 = vst.msk [vmem:[%s283_s24 + $0x8] sm:$0xff] %vm297_vm2, %v805_v48 }
 0x2e4   : > { %1224 = shalt.err (!%p1221_p13)
}
 0x2e5   : > { %s1225_s28 = scalar_lea.hbm %s1595_s30, 256  ;;  %s1229_s10 = scalar_lea.hbm %s1650_s3, 512 }
 0x2e6   : > { %p1226_p11 = scmp.ne.s32.totalorder %s1595_s30, %s1225_s28  ;;  %p1230_p7 = scmp.lt.u32.totalorder %s1595_s30, %s1650_s3 }
 0x2e7   : > { %p1231_p4 = scmp.lt.u32.totalorder %s1229_s10, %s1225_s28  ;;  %p1233_p0 = scmp.lt.u32.totalorder %s1225_s28, %s1595_s30 }
 0x2e8   : > { %p1227_p2 = pnand %p1226_p11, %p1679_p10 }
 0x2e9   : > { %p1232_p3 = por %p1231_p4, %p1230_p7 }
 0x2ea   : > { %p1228_p5 = pneg %p1227_p2 }
 0x2eb   : > { %p1234_p8 = por %p1233_p0, %p1232_p3 }
 0x2ed   : > { %p1235_p9 = pnand %p1234_p8, %p1228_p5 }
 0x2ef   : > { %1238 = shalt.err (!%p1235_p9)
}
 0x2f0   : > { %s1309_s11 = smov 128   ;;  %s1310_s19 = smov 8  }
 0x2f1   : > { %1031 = dma.vmem_to_hbm [thread:$0]  (%p1679_p10), %s1597_s20, 256, %s1595_s30, %s809_s6, %s1309_s11, %s1309_s11, %s1310_s19  }
 0x2f2 PF: > { %s837_s9 = sand.u32 1, %s1277_s12   ;;  %p1680_p12 = scmp.ne.s32.totalorder %s1667_s27, 0 }
 0x2f3   : > { %p1681_p1 = scmp.ge.s32.totalorder %s1297_s17, 2  ;;  %s838_s18 = scalar_lea.sflag [#allocation7], %s837_s9 }
 0x2f5   : > { %p1044_p6 = pnand %p1681_p1, %p1680_p12 }
 0x2f7   : > { %1272 = dma.done.wait (!%p1044_p6), %s838_s18, 256  }
 0x2f8   : > { %1274 = vsyncadd (!%p1044_p6), %s838_s18, 4294967040  ;;  %s22_s17 = sadd.s32 1, %s1297_s17   ;;  %s1682_s24 = sld [smem:[#allocation17_spill]] }
 0x2f9   : > { %p19_p13 = scmp.ge.s32.totalorder %s22_s17, 4   ;;  %s1683_s15 = sld [smem:[#allocation15_spill]] }
 0x2fa   : > { %s1684_s16 = sld [smem:[#allocation16_spill]]  ;;  %s1685_s12 = smov %s1281_s13 }
 0x2fb   : > { %s1686_s13 = smov %s1285_s14  ;;  %21 = sbr.rel (!%p19_p13) target bundleno = 10 (0xa), region = 109 }
 0x2fe   : > { %s1687_s14 = smov %s1682_s24 }
 0x302   :  { %843 = vsyncpa [#allocation6], 1 }
 0x303   :  { %845 = vsyncpa [#allocation6 + $0x1], 1 }
 0x304   :  { %846 = vsyncpa [#allocation9], 1 }
 0x305   :  { %848 = vsyncpa [#allocation9 + $0x1], 1 }
 0x306   :  { %849 = vsyncpa [#allocation7], 1 }
 0x307   :  { %851 = vsyncpa [#allocation7 + $0x1], 1 }

</bundles_post_ra>
